<compile_context>
chip_gen: v7x
topology: tpu7x:2x2x1
jax: 0.10.0
libtpu: 0.0.40
codegen_flags: <defaults>
</compile_context>

<pallas_src>
import functools

import jax
import jax.numpy as jnp
import numpy as np
from jax.experimental import pallas as pl
from jax.experimental.pallas import tpu as pltpu


def _channel_attention_kernel(x_ref, sel_ref, selT_ref, mask_ref,
                              w1_ref, b1_ref, w2_ref, b2_ref, o_ref, *, inv_hw):
    # x_ref:   (R, HW)  with R = Bb*C (sublane-packed rows, one per (b, c))
    # sel_ref: (Bb, R)  sel[b, r]  = 1 if r // C == b
    # selT_ref:(R, Bb)  transpose of sel (passed pre-transposed; no XLU transpose)
    # mask_ref:(R, C)   mask[r, c] = 1 if r %  C == c
    # w1_ref:  (C, hidden)   b1_ref: (1, hidden)
    # w2_ref:  (hidden, C)   b2_ref: (1, C)
    # o_ref:   (R, HW)

    # --- Global average pool over the spatial (lane) axis --------------------
    # First streaming read of the tile; constant multiply instead of a divide.
    row_sum = jnp.sum(x_ref[...].astype(jnp.float32), axis=-1, keepdims=True)   # (R, 1)
    q_rows = row_sum * inv_hw                                                   # (R, 1)

    # --- (R, 1) -> (Bb, C) gather via masked MXU matmul -----------------------
    q = jnp.dot(sel_ref[...], q_rows * mask_ref[...],
                preferred_element_type=jnp.float32)                             # (Bb, C)

    # --- Tiny MLP: fc1 + ReLU, fc2 + sigmoid ----------------------------------
    h = jnp.dot(q, w1_ref[...], preferred_element_type=jnp.float32) + b1_ref[...]
    h = jnp.maximum(h, 0.0)                                                     # (Bb, hidden)
    s = jnp.dot(h, w2_ref[...], preferred_element_type=jnp.float32) + b2_ref[...]
    s = jax.nn.sigmoid(s)                                                       # (Bb, C)

    # --- (Bb, C) -> (R, 1) scatter back to a per-row scale --------------------
    s_rows = jnp.sum(
        jnp.dot(selT_ref[...], s, preferred_element_type=jnp.float32) * mask_ref[...],
        axis=-1, keepdims=True)                                                 # (R, 1)

    # --- Channel-wise rescale: second streaming read of the tile --------------
    o_ref[...] = (x_ref[...].astype(jnp.float32) * s_rows).astype(o_ref.dtype)


def _pick_batch_tile(B, C, HW, itemsize, budget_bytes=4 * 1024 * 1024):
    """Largest divisor Bb of B whose (Bb*C, HW) input block fits the budget and
    keeps the sublane block dim a multiple of 8 (or the full extent)."""
    for bb in range(B, 0, -1):
        if B % bb:
            continue
        fits = bb * C * HW * itemsize <= budget_bytes
        aligned = (bb * C) % 8 == 0 or bb == B
        if fits and aligned:
            return bb
    return 1


def channel_attention(x, w1, b1, w2, b2):
    """x: (B, C, H, W); w1: (C, hidden); b1: (hidden,); w2: (hidden, C); b2: (C,)."""
    B, C, H, W = x.shape
    HW = H * W
    hidden = w1.shape[1]

    Bb = _pick_batch_tile(B, C, HW, jnp.dtype(x.dtype).itemsize)
    R = Bb * C                     # rows per block (sublane axis)

    # Sublane-packed 2-D view: row r = b*C + c  ->  x[b, c, :, :].ravel()
    x2d = x.reshape(B * C, HW)

    # Tiny constant selection/mask matrices implementing the
    # (Bb*C, 1) <-> (Bb, C) "reshape" as MXU matmuls (no in-kernel relayout).
    rows = np.arange(R)
    sel = (rows[None, :] // C == np.arange(Bb)[:, None]).astype(np.float32)   # (Bb, R)
    selT = np.ascontiguousarray(sel.T)                                        # (R, Bb)
    mask = (rows[:, None] % C == np.arange(C)[None, :]).astype(np.float32)    # (R, C)

    b1_2d = b1.reshape(1, hidden)
    b2_2d = b2.reshape(1, C)

    kernel = functools.partial(_channel_attention_kernel, inv_hw=1.0 / HW)

    itemsize = jnp.dtype(x.dtype).itemsize
    cost = pl.CostEstimate(
        flops=int(2 * B * C * HW                     # pool sum + rescale multiply
                  + 4 * B * C * hidden),             # fc1 + fc2
        transcendentals=int(B * C),                  # sigmoid
        bytes_accessed=int(2 * B * C * HW * itemsize # x in + out
                           + (C * hidden + hidden * C + hidden + C) * 4),
    )

    out = pl.pallas_call(
        kernel,
        out_shape=jax.ShapeDtypeStruct((B * C, HW), x.dtype),
        grid_spec=pltpu.PrefetchScalarGridSpec(
            num_scalar_prefetch=0,
            grid=(B // Bb,),
            in_specs=[
                pl.BlockSpec((R, HW), lambda i: (i, 0)),       # x slab (batch-tiled)
                pl.BlockSpec((Bb, R), lambda i: (0, 0)),       # sel   (resident)
                pl.BlockSpec((R, Bb), lambda i: (0, 0)),       # selT  (resident)
                pl.BlockSpec((R, C), lambda i: (0, 0)),        # mask  (resident)
                pl.BlockSpec((C, hidden), lambda i: (0, 0)),   # w1 (in, out)
                pl.BlockSpec((1, hidden), lambda i: (0, 0)),   # b1
                pl.BlockSpec((hidden, C), lambda i: (0, 0)),   # w2 (in, out)
                pl.BlockSpec((1, C), lambda i: (0, 0)),        # b2
            ],
            out_specs=pl.BlockSpec((R, HW), lambda i: (i, 0)),
        ),
        compiler_params=pltpu.CompilerParams(
            dimension_semantics=("parallel",),
            # Headroom above the default scoped limit: ~4 * 4 MiB double-buffered
            # x/out blocks plus small operands; safe on all generations
            # (< 64 MiB physical on v7x, < 128 MiB on v5e/v6e).
            vmem_limit_bytes=48 * 1024 * 1024,
        ),
        cost_estimate=cost,
    )(x2d, jnp.asarray(sel), jnp.asarray(selT), jnp.asarray(mask),
      w1, b1_2d, w2, b2_2d)

    return out.reshape(B, C, H, W)


def _reference(x, w1, b1, w2, b2):
    q = jnp.mean(x, axis=(2, 3))                       # (B, C)
    h = jnp.maximum(q @ w1 + b1, 0.0)                  # (B, hidden)
    s = jax.nn.sigmoid(h @ w2 + b2)                    # (B, C)
    return x * s[:, :, None, None]


if __name__ == "__main__":
    # Small shapes consistent with the module: size=16 (spatial), depth=4, hidden=32.
    B, C, H, W = 2, 4, 16, 16
    hidden = 32

    key = jax.random.PRNGKey(0)
    kx, k1, k2, k3, k4 = jax.random.split(key, 5)

    x = jax.random.normal(kx, (B, C, H, W), dtype=jnp.float32)
    # fc1: Linear(depth -> hidden); stored pre-transposed as (depth, hidden).
    w1 = jax.random.normal(k1, (C, hidden), dtype=jnp.float32) * 0.1
    b1 = jax.random.normal(k2, (hidden,), dtype=jnp.float32) * 0.1
    # fc2: Linear(hidden -> depth); stored pre-transposed as (hidden, depth).
    w2 = jax.random.normal(k3, (hidden, C), dtype=jnp.float32) * 0.1
    b2 = jax.random.normal(k4, (C,), dtype=jnp.float32) * 0.1

    out = channel_attention(x, w1, b1, w2, b2)
    out = jax.block_until_ready(out)

    ref = _reference(x, w1, b1, w2, b2)
    np.testing.assert_allclose(np.asarray(out), np.asarray(ref), rtol=1e-5, atol=1e-5)

    print("KERNEL_OK")
</pallas_src>

<mosaic_0001>
module attributes {stable_mosaic.version = 11 : i64} {
  func.func @_channel_attention_kernel(%arg0: i32, %arg1: memref<8x256xf32, #tpu.memory_space<vmem>>, %arg2: memref<2x8xf32, #tpu.memory_space<vmem>>, %arg3: memref<8x2xf32, #tpu.memory_space<vmem>>, %arg4: memref<8x4xf32, #tpu.memory_space<vmem>>, %arg5: memref<4x32xf32, #tpu.memory_space<vmem>>, %arg6: memref<1x32xf32, #tpu.memory_space<vmem>>, %arg7: memref<32x4xf32, #tpu.memory_space<vmem>>, %arg8: memref<1x4xf32, #tpu.memory_space<vmem>>, %arg9: memref<8x256xf32, #tpu.memory_space<vmem>>) attributes {dimension_semantics = [#tpu.dimension_semantics<parallel>], iteration_bounds = array<i64: 1>, scalar_prefetch = 0 : i64, scratch_operands = 0 : i64, tpu.core_type = #tpu.core_type<tc>, window_params = [{transform_indices = @transform_0, window_bounds = array<i64: 8, 256>}, {pipeline_mode = #tpu.pipeline_mode<synchronous>, transform_indices = @transform_1, window_bounds = array<i64: 2, 8>}, {pipeline_mode = #tpu.pipeline_mode<synchronous>, transform_indices = @transform_2, window_bounds = array<i64: 8, 2>}, {pipeline_mode = #tpu.pipeline_mode<synchronous>, transform_indices = @transform_3, window_bounds = array<i64: 8, 4>}, {pipeline_mode = #tpu.pipeline_mode<synchronous>, transform_indices = @transform_4, window_bounds = array<i64: 4, 32>}, {pipeline_mode = #tpu.pipeline_mode<synchronous>, transform_indices = @transform_5, window_bounds = array<i64: 1, 32>}, {pipeline_mode = #tpu.pipeline_mode<synchronous>, transform_indices = @transform_6, window_bounds = array<i64: 32, 4>}, {pipeline_mode = #tpu.pipeline_mode<synchronous>, transform_indices = @transform_7, window_bounds = array<i64: 1, 4>}, {transform_indices = @transform_8, window_bounds = array<i64: 8, 256>}]} {
    %c0 = arith.constant 0 : index
    %c0_0 = arith.constant 0 : index
    %0 = vector.load %arg1[%c0, %c0_0] : memref<8x256xf32, #tpu.memory_space<vmem>>, vector<8x256xf32>
    %cst = arith.constant dense<0.000000e+00> : vector<8xf32>
    %1 = vector.multi_reduction <add>, %0, %cst [1] : vector<8x256xf32> to vector<8xf32>
    %2 = vector.shape_cast %1 : vector<8xf32> to vector<8x1xf32>
    %cst_1 = arith.constant 3.906250e-03 : f32
    %3 = vector.broadcast %cst_1 : f32 to vector<8x1xf32>
    %4 = arith.mulf %2, %3 : vector<8x1xf32>
    %c0_2 = arith.constant 0 : index
    %c0_3 = arith.constant 0 : index
    %5 = vector.load %arg2[%c0_2, %c0_3] : memref<2x8xf32, #tpu.memory_space<vmem>>, vector<2x8xf32>
    %c0_4 = arith.constant 0 : index
    %c0_5 = arith.constant 0 : index
    %6 = vector.load %arg4[%c0_4, %c0_5] : memref<8x4xf32, #tpu.memory_space<vmem>>, vector<8x4xf32>
    %7 = vector.broadcast %4 : vector<8x1xf32> to vector<8x4xf32>
    %8 = arith.mulf %7, %6 : vector<8x4xf32>
    %cst_6 = arith.constant dense<0.000000e+00> : vector<2x4xf32>
    %9 = tpu.matmul %5, %8, %cst_6 {dimension_numbers = #tpu.dot_dimension_numbers<[1], [0], [0], [1], [0, 0, 1, 1], [], []>} : vector<2x8xf32>, vector<8x4xf32>, vector<2x4xf32> -> vector<2x4xf32>
    %c0_7 = arith.constant 0 : index
    %c0_8 = arith.constant 0 : index
    %10 = vector.load %arg5[%c0_7, %c0_8] : memref<4x32xf32, #tpu.memory_space<vmem>>, vector<4x32xf32>
    %cst_9 = arith.constant dense<0.000000e+00> : vector<2x32xf32>
    %11 = tpu.matmul %9, %10, %cst_9 {dimension_numbers = #tpu.dot_dimension_numbers<[1], [0], [0], [1], [0, 0, 1, 1], [], []>} : vector<2x4xf32>, vector<4x32xf32>, vector<2x32xf32> -> vector<2x32xf32>
    %c0_10 = arith.constant 0 : index
    %c0_11 = arith.constant 0 : index
    %12 = vector.load %arg6[%c0_10, %c0_11] : memref<1x32xf32, #tpu.memory_space<vmem>>, vector<1x32xf32>
    %13 = vector.broadcast %12 : vector<1x32xf32> to vector<2x32xf32>
    %14 = arith.addf %11, %13 : vector<2x32xf32>
    %cst_12 = arith.constant 0.000000e+00 : f32
    %15 = vector.broadcast %cst_12 : f32 to vector<2x32xf32>
    %16 = arith.maximumf %14, %15 : vector<2x32xf32>
    %c0_13 = arith.constant 0 : index
    %c0_14 = arith.constant 0 : index
    %17 = vector.load %arg7[%c0_13, %c0_14] : memref<32x4xf32, #tpu.memory_space<vmem>>, vector<32x4xf32>
    %cst_15 = arith.constant dense<0.000000e+00> : vector<2x4xf32>
    %18 = tpu.matmul %16, %17, %cst_15 {dimension_numbers = #tpu.dot_dimension_numbers<[1], [0], [0], [1], [0, 0, 1, 1], [], []>} : vector<2x32xf32>, vector<32x4xf32>, vector<2x4xf32> -> vector<2x4xf32>
    %c0_16 = arith.constant 0 : index
    %c0_17 = arith.constant 0 : index
    %19 = vector.load %arg8[%c0_16, %c0_17] : memref<1x4xf32, #tpu.memory_space<vmem>>, vector<1x4xf32>
    %20 = vector.broadcast %19 : vector<1x4xf32> to vector<2x4xf32>
    %21 = arith.addf %18, %20 : vector<2x4xf32>
    %22 = arith.negf %21 : vector<2x4xf32>
    %23 = math.exp %22 : vector<2x4xf32>
    %cst_18 = arith.constant 1.000000e+00 : f32
    %24 = vector.broadcast %cst_18 : f32 to vector<2x4xf32>
    %25 = arith.addf %24, %23 : vector<2x4xf32>
    %26 = arith.divf %24, %25 : vector<2x4xf32>
    %c0_19 = arith.constant 0 : index
    %c0_20 = arith.constant 0 : index
    %27 = vector.load %arg3[%c0_19, %c0_20] : memref<8x2xf32, #tpu.memory_space<vmem>>, vector<8x2xf32>
    %cst_21 = arith.constant dense<0.000000e+00> : vector<8x4xf32>
    %28 = tpu.matmul %27, %26, %cst_21 {dimension_numbers = #tpu.dot_dimension_numbers<[1], [0], [0], [1], [0, 0, 1, 1], [], []>} : vector<8x2xf32>, vector<2x4xf32>, vector<8x4xf32> -> vector<8x4xf32>
    %c0_22 = arith.constant 0 : index
    %c0_23 = arith.constant 0 : index
    %29 = vector.load %arg4[%c0_22, %c0_23] : memref<8x4xf32, #tpu.memory_space<vmem>>, vector<8x4xf32>
    %30 = arith.mulf %28, %29 : vector<8x4xf32>
    %cst_24 = arith.constant dense<0.000000e+00> : vector<8xf32>
    %31 = vector.multi_reduction <add>, %30, %cst_24 [1] : vector<8x4xf32> to vector<8xf32>
    %32 = vector.shape_cast %31 : vector<8xf32> to vector<8x1xf32>
    %c0_25 = arith.constant 0 : index
    %c0_26 = arith.constant 0 : index
    %33 = vector.load %arg1[%c0_25, %c0_26] : memref<8x256xf32, #tpu.memory_space<vmem>>, vector<8x256xf32>
    %34 = vector.broadcast %32 : vector<8x1xf32> to vector<8x256xf32>
    %35 = arith.mulf %33, %34 : vector<8x256xf32>
    %c0_27 = arith.constant 0 : index
    %c0_28 = arith.constant 0 : index
    %36 = vector.load %arg9[%c0_27, %c0_28] : memref<8x256xf32, #tpu.memory_space<vmem>>, vector<8x256xf32>
    tpu.vector_store %arg9[%c0_27, %c0_28], %35 {strides = array<i32>} : memref<8x256xf32, #tpu.memory_space<vmem>>, vector<8x256xf32>,
    return
  }
  func.func @transform_0(%arg0: i32) -> (i32, i32) {
    %c0_i32 = arith.constant 0 : i32
    %c0_i32_0 = arith.constant 0 : i32
    return %arg0, %c0_i32 : i32, i32
  }
  func.func @transform_1(%arg0: i32) -> (i32, i32) {
    %c0_i32 = arith.constant 0 : i32
    %c0_i32_0 = arith.constant 0 : i32
    %c0_i32_1 = arith.constant 0 : i32
    return %c0_i32, %c0_i32_0 : i32, i32
  }
  func.func @transform_2(%arg0: i32) -> (i32, i32) {
    %c0_i32 = arith.constant 0 : i32
    %c0_i32_0 = arith.constant 0 : i32
    %c0_i32_1 = arith.constant 0 : i32
    return %c0_i32, %c0_i32_0 : i32, i32
  }
  func.func @transform_3(%arg0: i32) -> (i32, i32) {
    %c0_i32 = arith.constant 0 : i32
    %c0_i32_0 = arith.constant 0 : i32
    %c0_i32_1 = arith.constant 0 : i32
    return %c0_i32, %c0_i32_0 : i32, i32
  }
  func.func @transform_4(%arg0: i32) -> (i32, i32) {
    %c0_i32 = arith.constant 0 : i32
    %c0_i32_0 = arith.constant 0 : i32
    %c0_i32_1 = arith.constant 0 : i32
    return %c0_i32, %c0_i32_0 : i32, i32
  }
  func.func @transform_5(%arg0: i32) -> (i32, i32) {
    %c0_i32 = arith.constant 0 : i32
    %c0_i32_0 = arith.constant 0 : i32
    %c0_i32_1 = arith.constant 0 : i32
    return %c0_i32, %c0_i32_0 : i32, i32
  }
  func.func @transform_6(%arg0: i32) -> (i32, i32) {
    %c0_i32 = arith.constant 0 : i32
    %c0_i32_0 = arith.constant 0 : i32
    %c0_i32_1 = arith.constant 0 : i32
    return %c0_i32, %c0_i32_0 : i32, i32
  }
  func.func @transform_7(%arg0: i32) -> (i32, i32) {
    %c0_i32 = arith.constant 0 : i32
    %c0_i32_0 = arith.constant 0 : i32
    %c0_i32_1 = arith.constant 0 : i32
    return %c0_i32, %c0_i32_0 : i32, i32
  }
  func.func @transform_8(%arg0: i32) -> (i32, i32) {
    %c0_i32 = arith.constant 0 : i32
    %c0_i32_0 = arith.constant 0 : i32
    return %arg0, %c0_i32 : i32, i32
  }
}

</mosaic_0001>

<bundles_post_ra>
// kernel: tpu_custom_call.1
= control target key start
LH: loop header
LB: loop body
LE: loop exit
PB: predicated region body
PF: predicated region fallthrough
CT: control target
= control target key end

     0   :  { %s587_s0 = inlined_call_operand.vmem [shape: f32[8,256], index: 0, kind: input, shape index: {}]   ;;  %s588_s1 = inlined_call_operand.vmem [shape: f32[2,8], index: 1, kind: input, shape index: {}]   ;;  %s589_s2 = inlined_call_operand.vmem [shape: f32[8,2], index: 2, kind: input, shape index: {}]   ;;  %s590_s3 = inlined_call_operand.vmem [shape: f32[8,4], index: 3, kind: input, shape index: {}]   ;;  %s591_s4 = inlined_call_operand.vmem [shape: f32[4,32], index: 4, kind: input, shape index: {}]   ;;  %s592_s5 = inlined_call_operand.vmem [shape: f32[1,32], index: 5, kind: input, shape index: {}]   ;;  %s593_s6 = inlined_call_operand.vmem [shape: f32[32,4], index: 6, kind: input, shape index: {}]   ;;  %s594_s7 = inlined_call_operand.vmem [shape: f32[1,4], index: 7, kind: input, shape index: {}]   ;;  %s595_s8 = inlined_call_operand.hbm [shape: f32[8,256], index: 8, kind: output, shape index: {}]  }
   0x1   :  { %v528_v0 = vld [vmem:[%s587_s0] sm:$0xff]  ;;  %v533_v1 = vld [vmem:[%s587_s0 + $0x8] sm:$0xff] }
   0x2   :  { %13 = vsyncpa [#allocation3], 0  ;;  %v32_v2 = vadd.f32 %v533_v1, %v528_v0  ;;  %v476_v3 = vmov 0.0   ;;  %vm477_vm0 = vmmov 0   ;;  %v37_v5 = vld [vmem:[%s590_s3] sm:$0xff]  ;;  %vm39_vm1 = vcmask 64512  }
   0x3   :  { %412 = vmatprep.subr.mxu0 %v476_v3  ;;  %417 = vmatprep.subr.mxu1 %v476_v3  ;;  %v36_v8 = vld [vmem:[%s588_s1] sm:$0x3]  ;;  %vm125_vm2 = vcmask 1043456   ;;  %v201_v11 = vld [vmem:[%s593_s6 + $0x8] sm:$0xff]  ;;  %v478_v12 = vmov 0.0|0.0   ;;  %vm121_vm3 = vcmask 31744  }
   0x4   :  { %33 = vadd.xlane.f32.xlu0 %v32_v2  ;;  %414 = vmatprep.mubr.msk.f32.mxu0 %vm477_vm0, %v476_v3  ;;  %v113_v9 = vld [vmem:[%s591_s4] sm:$0xf]  ;;  %v202_v16 = vld [vmem:[%s593_s6 + $0x10] sm:$0xff]  ;;  %v203_v17 = vld [vmem:[%s593_s6 + $0x18] sm:$0xff]  ;;  %vm211_vm4 = vcmask 261120   ;;  %vm296_vm5 = vcmask 1041408  }
   0x5   :  { %419 = vmatprep.mubr.msk.f32.mxu1 %vm477_vm0, %v476_v3  ;;  %418 = vmatpush3.msk.msra.mxu1 %vm125_vm2, %v113_v9  ;;  %v200_v10 = vld [vmem:[%s593_s6] sm:$0xff]  ;;  %v442_v18 = vpack.c.bf16 %v203_v17, %v202_v16  ;;  %vm292_vm6 = vcmask 15360  }
   0x6   :  { %433 = vmatprep.subr.mxu1 %v476_v3  ;;  %v439_v13 = vpack.c.bf16 %v201_v11, %v200_v10  ;;  %v393_v19 = vld [vmem:[%s592_s5] ss:$0 sm:$0xff] }
   0x7   :  { %v396_v24 = vld [vmem:[%s594_s7] ss:$0 sm:$0xff]  ;;  %s479_s7 = smov [#allocation2]  }
   0x8   :  { %v291_v31 = vld [vmem:[%s589_s2] sm:$0xff]  ;;  %s384_s23 = sshll.u32 %s479_s7, 4  ;;  %s385_s23 = int_to_ptr.vmem [resolvable:$true] %s384_s23 }
   0x9   :  { %s452_s2 = scalar_lea.vmem %s385_s23, 256  ;;  %p457_p1 = scmp.lt.s32.totalorder %s385_s23, %s385_s23 }
   0xa   :  { %p453_p0 = scmp.ne.s32.totalorder %s385_s23, %s452_s2  ;;  %p458_p2 = scmp.lt.s32.totalorder %s452_s2, %s452_s2 }
   0xc   :  { %p459_p3 = por %p458_p2, %p457_p1 }
   0xe   :  { %p460_p4 = pnand %p459_p3, %p453_p0 }
  0x91   :  { %v34_v4 = vpop.xlane.xlu0 %33 }
  0x92   :  { %v35_v6 = vmul.f32 0.00390625, %v34_v4 }
  0x94   :  { %v38_v7 = vmul.f32 %v37_v5, %v35_v6 }
  0x96   :  { %413 = vmatpush3.msra.mxu0 %v38_v7 }
  0x97   :  { %415 = vmatmul.mubr.msk.f32.vlgmr.msra.gmra.mrb[0].mxu0 %vm39_vm1, %v36_v8  ;;  %438 = vmatprep.subr.bf16.mxu0 %v478_v12 }
  0x98   :  { %430 = vmatprep.mubr.msk.f32.mxu0 %vm477_vm0, %v476_v3  ;;  %440 = vmatpush3.bf16.msra.mxu0 %v439_v13 }
  0x99   :  { %441 = vmatprep.subr.bf16.mxu0 %v478_v12 }
  0x9c   :  { %443 = vmatpush3.bf16.msra.mxu0 %v442_v18 }
 0x16a   :  { %v109_v14 = vpop.f32.mrb[0].mxu0 }
 0x16b   :  { %v416_v15 = vpop.f32.mrb[1].mxu0  ;;  %420 = vmatmul.mubr.msk.f32.vlgmr.msra.gmra.mrb[0].mxu1 %vm121_vm3, %v109_v14 }
 0x16c   :  { %435 = vmatprep.mubr.msk.f32.mxu1 %vm477_vm0, %v476_v3 }
 0x23e   :  { %v195_v20 = vpop.f32.mrb[0].mxu1 }
 0x23f   :  { %v196_v21 = vadd.f32 %v393_v19, %v195_v20  ;;  %v421_v22 = vpop.f32.mrb[1].mxu1 }
 0x241   :  { %v199_v23 = vmax.f32 %v196_v21, 0.0 }
 0x243   :  { %431 = vmatmul.mubr.msk.f32.vlgmr.msra.gmra.mrb[2].mxu0 %vm211_vm4, %v199_v23 }
 0x316   :  { %v281_v25 = vpop.f32.mrb[2].mxu0 }
 0x317   :  { %v282_v26 = vadd.f32 %v396_v24, %v281_v25  ;;  %v432_v27 = vpop.f32.mrb[3].mxu0 }
 0x319   :  { %v398_v28 = vmul.f32 -1.442695, %v282_v26 }
 0x31b   :  { %448 = vpow2.f32 %v398_v28 }
 0x325   :  { %v449_v29 = vpop.eup %448 }
 0x326   :  { %v288_v30 = vadd.f32 1.0, %v449_v29 }
 0x328   :  { %450 = vrcp.f32 %v288_v30 }
 0x332   :  { %v451_v32 = vpop.eup %450 }
 0x333   :  { %434 = vmatpush3.msk.msra.mxu1 %vm296_vm5, %v451_v32 }
 0x334   :  { %436 = vmatmul.mubr.msk.f32.vlgmr.msra.gmra.mrb[2].mxu1 %vm292_vm6, %v291_v31 }
 0x407   :  { %v366_v33 = vpop.f32.mrb[2].mxu1 }
 0x408   :  { %v370_v34 = vmul.f32 %v366_v33, %v37_v5  ;;  %v437_v35 = vpop.f32.mrb[3].mxu1 }
 0x40a   :  { %v371_v36 = vsel %vm121_vm3, %v370_v34, 0.0 }
 0x40b   :  { %372 = vadd.xlane.f32.xlu0 %v371_v36 }
 0x498   :  { %v373_v37 = vpop.xlane.xlu0 %372 }
 0x499   :  { %v374_v38 = vmul.f32 %v373_v37, %v528_v0  ;;  %v375_v39 = vmul.f32 %v373_v37, %v533_v1 }
 0x49b   :  { %376 = vst [vmem:[#allocation2] sm:$0xff] %v374_v38  ;;  %377 = vst [vmem:[#allocation2 + $0x8] sm:$0xff] %v375_v39 }
 0x49c   :  { %463 = shalt.err (!%p460_p4)
}
 0x49d   :  { %s464_s26 = scalar_lea.hbm %s595_s8, 256 }
 0x49e   :  { %p465_p5 = scmp.ne.s32.totalorder %s595_s8, %s464_s26  ;;  %p468_p6 = scmp.lt.u32.totalorder %s464_s26, %s595_s8 }
 0x4a0   :  { %p470_p7 = pnand %p468_p6, %p465_p5 }
 0x4a2   :  { %473 = shalt.err (!%p470_p7)
}
 0x4a3   :  { %387 = dma.vmem_to_hbm [thread:$0]  %s385_s23, 256, %s595_s8, [#allocation3]  }
 0x4a4   :  { %474 = dma.done.wait [#allocation3], 256  }
 0x4a5   :  { %475 = vsyncadd [#allocation3], 4294967040 }
 0x4a6   :  { %391 = vsyncpa [#allocation3], 1 }

</bundles_post_ra>
